<compile_context>
chip_gen: v7x
topology: tpu7x:2x2x1
jax: 0.10.0
libtpu: 0.0.40
codegen_flags: <defaults>
</compile_context>

<pallas_src>
import numpy as np
import jax
import jax.numpy as jnp
from jax.experimental import pallas as pl
from jax.experimental.pallas import tpu as pltpu

N = 16          # batch of architecture encodings
F = 24          # arch-encoder feature dimension
T = 8           # number of oblivious trees in the ensemble
D = 4           # tree depth (oblivious: one (feature, threshold) split per level)
L = 2 ** D      # leaves per tree
TD = T * D      # 32
TL = T * L      # 128  (lane-dense leaf row)


def catboost_kernel(x_ref, selthr_ref, tree_ref, o_ref):
    x = x_ref[...]                                     # [N, F]
    sel = selthr_ref[:F, :]                            # [F, TD]  one-hot feature selector
    thr = selthr_ref[F:F + 1, :]                       # [1, TD]  per-split thresholds
    # one-hot gather of the split feature per (tree, depth); HIGHEST precision keeps
    # the gathered value bit-exact f32 so the compare matches the reference strictly
    fm = jnp.dot(x, sel, preferred_element_type=jnp.float32,
                 precision=jax.lax.Precision.HIGHEST)  # [N, TD] == x[:, feat_idx]
    bits = (fm > thr).astype(jnp.float32)              # [N, TD]  VPU compare (broadcast row)
    pr = tree_ref[:TD, :]                              # [TD, TL] bits -> leaf idx, replicated
    iota = tree_ref[TD:TD + 1, :]                      # [1, TL]  leaf position within tree
    leaf = tree_ref[TD + 1:TD + 2, :]                  # [1, TL]  leaf values (bias folded in)
    # second MXU pass: per-tree binary leaf index broadcast over that tree's leaf slots
    leaf_rep = jnp.dot(bits, pr, preferred_element_type=jnp.float32)   # [N, TL]
    # one-hot match (integer-valued, guarded), select + per-row lane reduce
    match = (jnp.abs(leaf_rep - iota) < 0.5).astype(jnp.float32)       # [N, TL]
    o_ref[...] = jnp.sum(match * leaf, axis=-1, keepdims=True)         # [N, 1]


def build_dense_params(feat_idx, thresholds, leaf_vals, bias):
    """Turn (feature_idx, threshold, leaf_value) tree params into two dense slabs."""
    S = np.zeros((F, TD), np.float32)          # one-hot feature selector
    thr_row = np.zeros((1, TD), np.float32)    # per-split thresholds
    P = np.zeros((TD, T), np.float32)          # bits -> leaf index (2^d weights)
    R = np.zeros((T, TL), np.float32)          # repeat leaf index over that tree's slots
    iota = np.zeros((1, TL), np.float32)       # leaf position within each tree
    leaf_row = np.asarray(leaf_vals, np.float32).reshape(1, TL).copy()
    leaf_row[0, :L] += np.float32(bias)        # fold bias into tree 0's leaves
    for t in range(T):
        for d in range(D):
            c = t * D + d
            S[int(feat_idx[t, d]), c] = 1.0
            thr_row[0, c] = float(thresholds[t, d])
            P[c, t] = float(2 ** d)
        for j in range(L):
            R[t, t * L + j] = 1.0
            iota[0, t * L + j] = float(j)
    selthr = np.vstack([S, thr_row]).astype(np.float32)            # [F+1, TD]
    tree_slab = np.vstack([P @ R, iota, leaf_row]).astype(np.float32)  # [TD+2, TL]
    return jnp.asarray(selthr), jnp.asarray(tree_slab)


@jax.jit
def predictor_catboost_forward(x, selthr, tree_slab):
    n = x.shape[0]
    # Tiny problem (<100 KB) -> single gridless pallas_call; every operand is one
    # full-array VMEM block fetched exactly once, no grid/pipeline overhead.
    out = pl.pallas_call(
        catboost_kernel,
        out_shape=jax.ShapeDtypeStruct((n, 1), jnp.float32),
        in_specs=[pl.BlockSpec(memory_space=pltpu.MemorySpace.VMEM)] * 3,
        out_specs=pl.BlockSpec(memory_space=pltpu.MemorySpace.VMEM),
    )(x, selthr, tree_slab)
    return out[:, 0]   # model.predict returns shape (N,)


def reference_predict(x, feat_idx, thresholds, leaf_vals, bias):
    x = np.asarray(x)
    sel = x[:, np.asarray(feat_idx)]                              # [N, T, D]
    bits = (sel > np.asarray(thresholds)[None]).astype(np.int64)  # [N, T, D]
    idx = (bits * (2 ** np.arange(D))[None, None, :]).sum(-1)     # [N, T]
    pred = np.asarray(leaf_vals)[np.arange(T)[None, :], idx].sum(-1) + bias
    return pred.astype(np.float32)


if __name__ == "__main__":
    key = jax.random.PRNGKey(0)
    k_feat, k_thr, k_leaf, k_x = jax.random.split(key, 4)

    # deterministic synthetic CatBoost model parameters
    feat_idx = np.asarray(jax.random.randint(k_feat, (T, D), 0, F))
    thresholds = np.asarray(jax.random.normal(k_thr, (T, D), dtype=jnp.float32)) * 0.5
    leaf_vals = np.asarray(jax.random.normal(k_leaf, (T, L), dtype=jnp.float32)) * 0.1
    bias = 1.5

    selthr, tree_slab = build_dense_params(feat_idx, thresholds, leaf_vals, bias)

    # input: batch of arch-encoder feature vectors (what self.forward receives)
    x = jax.random.normal(k_x, (N, F), dtype=jnp.float32)

    y = predictor_catboost_forward(x, selthr, tree_slab)
    y = jax.block_until_ready(y)

    y_ref = reference_predict(np.asarray(x), feat_idx, thresholds, leaf_vals, bias)
    np.testing.assert_allclose(np.asarray(y), y_ref, rtol=1e-5, atol=1e-5)

    # TODO(synk): CatBoost .fit() (gradient-boosted training) has no Pallas equivalent;
    # only inference (forward) is implemented here.
    print("KERNEL_OK")
</pallas_src>

<mosaic_0001>
module attributes {stable_mosaic.version = 11 : i64} {
  func.func @catboost_kernel(%arg0: memref<16x24xf32, #tpu.memory_space<vmem>>, %arg1: memref<25x32xf32, #tpu.memory_space<vmem>>, %arg2: memref<34x128xf32, #tpu.memory_space<vmem>>, %arg3: memref<16x1xf32, #tpu.memory_space<vmem>>) attributes {dimension_semantics = [], scalar_prefetch = 0 : i64, scratch_operands = 0 : i64, tpu.core_type = #tpu.core_type<tc>} {
    %c0 = arith.constant 0 : index
    %c0_0 = arith.constant 0 : index
    %0 = vector.load %arg0[%c0, %c0_0] : memref<16x24xf32, #tpu.memory_space<vmem>>, vector<16x24xf32>
    %c0_1 = arith.constant 0 : index
    %c0_2 = arith.constant 0 : index
    %1 = vector.load %arg1[%c0_1, %c0_2] : memref<25x32xf32, #tpu.memory_space<vmem>>, vector<24x32xf32>
    %c24 = arith.constant 24 : index
    %c0_3 = arith.constant 0 : index
    %2 = vector.load %arg1[%c24, %c0_3] : memref<25x32xf32, #tpu.memory_space<vmem>>, vector<1x32xf32>
    %cst = arith.constant dense<0.000000e+00> : vector<16x32xf32>
    %3 = tpu.matmul %0, %1, %cst {dimension_numbers = #tpu.dot_dimension_numbers<[1], [0], [0], [1], [0, 0, 1, 1], [], []>, precision = #tpu.contract_precision<fp32>} : vector<16x24xf32>, vector<24x32xf32>, vector<16x32xf32> -> vector<16x32xf32>
    %4 = vector.broadcast %2 : vector<1x32xf32> to vector<16x32xf32>
    %5 = arith.cmpf ogt, %3, %4 : vector<16x32xf32>
    %6 = arith.extui %5 : vector<16x32xi1> to vector<16x32xi32>
    %7 = arith.sitofp %6 : vector<16x32xi32> to vector<16x32xf32>
    %c0_4 = arith.constant 0 : index
    %c0_5 = arith.constant 0 : index
    %8 = vector.load %arg2[%c0_4, %c0_5] : memref<34x128xf32, #tpu.memory_space<vmem>>, vector<32x128xf32>
    %c32 = arith.constant 32 : index
    %c0_6 = arith.constant 0 : index
    %9 = vector.load %arg2[%c32, %c0_6] : memref<34x128xf32, #tpu.memory_space<vmem>>, vector<1x128xf32>
    %c33 = arith.constant 33 : index
    %c0_7 = arith.constant 0 : index
    %10 = vector.load %arg2[%c33, %c0_7] : memref<34x128xf32, #tpu.memory_space<vmem>>, vector<1x128xf32>
    %cst_8 = arith.constant dense<0.000000e+00> : vector<16x128xf32>
    %11 = tpu.matmul %7, %8, %cst_8 {dimension_numbers = #tpu.dot_dimension_numbers<[1], [0], [0], [1], [0, 0, 1, 1], [], []>} : vector<16x32xf32>, vector<32x128xf32>, vector<16x128xf32> -> vector<16x128xf32>
    %12 = vector.broadcast %9 : vector<1x128xf32> to vector<16x128xf32>
    %13 = arith.subf %11, %12 : vector<16x128xf32>
    %14 = math.absf %13 : vector<16x128xf32>
    %cst_9 = arith.constant 5.000000e-01 : f32
    %15 = vector.broadcast %cst_9 : f32 to vector<16x128xf32>
    %16 = arith.cmpf olt, %14, %15 : vector<16x128xf32>
    %17 = arith.extui %16 : vector<16x128xi1> to vector<16x128xi32>
    %18 = arith.sitofp %17 : vector<16x128xi32> to vector<16x128xf32>
    %19 = vector.broadcast %10 : vector<1x128xf32> to vector<16x128xf32>
    %20 = arith.mulf %18, %19 : vector<16x128xf32>
    %cst_10 = arith.constant dense<0.000000e+00> : vector<16xf32>
    %21 = vector.multi_reduction <add>, %20, %cst_10 [1] : vector<16x128xf32> to vector<16xf32>
    %22 = vector.shape_cast %21 : vector<16xf32> to vector<16x1xf32>
    %c0_11 = arith.constant 0 : index
    %c0_12 = arith.constant 0 : index
    %23 = vector.load %arg3[%c0_11, %c0_12] : memref<16x1xf32, #tpu.memory_space<vmem>>, vector<16x1xf32>
    tpu.vector_store %arg3[%c0_11, %c0_12], %22 {strides = array<i32>} : memref<16x1xf32, #tpu.memory_space<vmem>>, vector<16x1xf32>,
    return
  }
}

</mosaic_0001>

<bundles_post_ra>
// kernel: predictor_catboost_forward.1
= control target key start
LH: loop header
LB: loop body
LE: loop exit
PB: predicated region body
PF: predicated region fallthrough
CT: control target
= control target key end

     0   :  { %8 = vsyncpa [#allocation3], 0  ;;  %s1035_s0 = inlined_call_operand.hbm [shape: f32[16,24], index: 0, kind: input, shape index: {}]   ;;  %s1036_s1 = inlined_call_operand.hbm [shape: f32[25,32], index: 1, kind: input, shape index: {}]   ;;  %s1037_s2 = inlined_call_operand.hbm [shape: f32[34,128], index: 2, kind: input, shape index: {}]   ;;  %s1038_s3 = inlined_call_operand.vmem [shape: f32[16,1], index: 3, kind: output, shape index: {}]  }
   0x1   :  { %9 = vsyncpa [#allocation5], 0  ;;  %s942_s12 = smov [#allocation4]   ;;  %s943_s14 = smov [#allocation2]  }
   0x2   :  { %s27_s13 = sshll.u32 %s942_s12, 4  ;;  %s15_s15 = sshll.u32 %s943_s14, 4  ;;  %s28_s13 = int_to_ptr.vmem [resolvable:$true] %s27_s13  ;;  %s968_s15 = int_to_ptr.vmem [resolvable:$true] %s15_s15 }
   0x3   :  { %s872_s18 = scalar_lea.hbm %s1036_s1, 512 }
   0x4   :  { %p873_p0 = scmp.ne.s32.totalorder %s1036_s1, %s872_s18  ;;  %p876_p1 = scmp.lt.u32.totalorder %s872_s18, %s1036_s1 }
   0x6   :  { %p878_p2 = pnand %p876_p1, %p873_p0 }
   0x8   :  { %881 = shalt.err (!%p878_p2)
}
   0x9   :  { %s882_s23 = scalar_lea.vmem %s28_s13, 512  ;;  %p887_p4 = scmp.lt.s32.totalorder %s28_s13, %s28_s13 }
   0xa   :  { %p883_p3 = scmp.ne.s32.totalorder %s28_s13, %s882_s23  ;;  %p888_p5 = scmp.lt.s32.totalorder %s882_s23, %s882_s23 }
   0xc   :  { %p889_p6 = por %p888_p5, %p887_p4 }
   0xe   :  { %p890_p7 = pnand %p889_p6, %p883_p3 }
  0x10   :  { %893 = shalt.err (!%p890_p7)
}
  0x11   :  { %s944_s24 = smov 128   ;;  %s945_s25 = smov 8  }
  0x12   :  { %33 = dma.hbm_to_vmem [thread:$0]  %s1036_s1, 512, %s28_s13, [#allocation5], %s944_s24, %s944_s24, %s945_s25  }
  0x13   :  { %s894_s30 = scalar_lea.hbm %s1035_s0, 256 }
  0x14   :  { %p895_p8 = scmp.ne.s32.totalorder %s1035_s0, %s894_s30  ;;  %p898_p9 = scmp.lt.u32.totalorder %s894_s30, %s1035_s0 }
  0x16   :  { %p900_p10 = pnand %p898_p9, %p895_p8 }
  0x18   :  { %903 = shalt.err (!%p900_p10)
}
  0x19   :  { %s904_s8 = scalar_lea.vmem %s968_s15, 256  ;;  %p909_p12 = scmp.lt.s32.totalorder %s968_s15, %s968_s15 }
  0x1a   :  { %p905_p11 = scmp.ne.s32.totalorder %s968_s15, %s904_s8  ;;  %p910_p13 = scmp.lt.s32.totalorder %s904_s8, %s904_s8 }
  0x1c   :  { %p911_p0 = por %p910_p13, %p909_p12 }
  0x1e   :  { %p912_p1 = pnand %p911_p0, %p905_p11 }
  0x20   :  { %915 = shalt.err (!%p912_p1)
}
  0x21   :  { %21 = dma.hbm_to_vmem [thread:$0]  %s1035_s0, 256, %s968_s15, [#allocation3], %s944_s24, %s944_s24, %s945_s25  }
  0x22   :  { %s946_s10 = smov [#allocation6]   ;;  %s916_s14 = scalar_lea.hbm %s1037_s2, 640 }
  0x23   :  { %s39_s11 = sshll.u32 %s946_s10, 4  ;;  %p917_p2 = scmp.ne.s32.totalorder %s1037_s2, %s916_s14  ;;  %s40_s11 = int_to_ptr.vmem [resolvable:$true] %s39_s11 }
  0x24   :  { %p920_p3 = scmp.lt.u32.totalorder %s916_s14, %s1037_s2 }
  0x26   :  { %p922_p4 = pnand %p920_p3, %p917_p2 }
  0x28   :  { %925 = shalt.err (!%p922_p4)
}
  0x29   :  { %s926_s20 = scalar_lea.vmem %s40_s11, 640  ;;  %p931_p6 = scmp.lt.s32.totalorder %s40_s11, %s40_s11 }
  0x2a   :  { %p927_p5 = scmp.ne.s32.totalorder %s40_s11, %s926_s20  ;;  %p932_p7 = scmp.lt.s32.totalorder %s926_s20, %s926_s20 }
  0x2c   :  { %p933_p8 = por %p932_p7, %p931_p6 }
  0x2e   :  { %p934_p9 = pnand %p933_p8, %p927_p5 }
  0x30   :  { %937 = shalt.err (!%p934_p9)
}
  0x31   :  { %45 = dma.hbm_to_vmem [thread:$0]  %s1037_s2, 640, %s40_s11, [#allocation5], %s944_s24, %s944_s24, %s945_s25  }
  0x32   :  { %938 = dma.done.wait [#allocation3], 256  }
  0x33   :  { %939 = vsyncadd [#allocation3], 4294967040 }
  0x34   :  { %940 = dma.done.wait [#allocation5], 1152  }
  0x35   :  { %941 = vsyncadd [#allocation5], 4294966144  ;;  %vm61_vm0 = vcmask 195584   ;;  %v57_v0 = vld [vmem:[#allocation4] sm:$0xff]  ;;  %v58_v1 = vld [vmem:[#allocation4 + $0x8] sm:$0xff]  ;;  %vm599_vm2 = vcmask 261120  }
  0x36   :  { %v59_v2 = vld [vmem:[#allocation4 + $0x10] sm:$0xff]  ;;  %v69_v3 = vand.u32 4294901760, %v57_v0  ;;  %v72_v4 = vand.u32 4294901760, %v58_v1  ;;  %v56_v7 = vld [vmem:[#allocation2 + $0x8] sm:$0xff]  ;;  %v593_v36 = vld [vmem:[#allocation6] sm:$0xff]  ;;  %v947_v49 = vmov 0.0  }
  0x37   :  { %v1020_v5 = vand.u32 4294901760, %v59_v2  ;;  %v55_v6 = vld [vmem:[#allocation2] sm:$0xff]  ;;  %v66_v9 = vsel %vm61_vm0, %v56_v7, 0  ;;  %v594_v37 = vld [vmem:[#allocation6 + $0x8] sm:$0xff]  ;;  %v596_v40 = vld [vmem:[#allocation6 + $0x18] sm:$0xff]  ;;  %vm705_vm6 = vcmask 7168  }
  0x38   :  { %v63_v8 = vsel %vm61_vm0, %v55_v6, 0  ;;  %v824_v10 = vpack.c.bf16 %v72_v4, %v69_v3  ;;  %v158_v11 = vsub.f32 %v57_v0, %v69_v3  ;;  %v165_v12 = vsub.f32 %v58_v1, %v72_v4  ;;  %v595_v39 = vld [vmem:[#allocation6 + $0x10] sm:$0xff]  ;;  %v714_v44 = vld [vmem:[#allocation4 + $0x18] ss:$0 sm:$0xff]  ;;  %v719_v52 = vld [vmem:[#allocation6 + $0x20] ss:$0 sm:$0xff] }
  0x39   :  { %v172_v13 = vsub.f32 %v59_v2, %v1020_v5  ;;  %v136_v14 = vand.u32 4294901760, %v63_v8  ;;  %v146_v15 = vand.u32 4294901760, %v66_v9  ;;  %v848_v38 = vpack.c.bf16 %v594_v37, %v593_v36  ;;  %v722_v59 = vld [vmem:[#allocation6 + $0x21] ss:$0 sm:$0xff] }
  0x3a   :  { %v832_v16 = vpack.c.bf16 %v165_v12, %v158_v11  ;;  %825 = vmatprep.subr.bf16.mxu1 %v824_v10  ;;  %v159_v17 = vand.u32 4294901760, %v158_v11  ;;  %v166_v18 = vand.u32 4294901760, %v165_v12  ;;  %v852_v41 = vpack.c.bf16 %v596_v40, %v595_v39 }
  0x3b   :  { %v137_v19 = vsub.f32 %v63_v8, %v136_v14  ;;  %v147_v20 = vsub.f32 %v66_v9, %v146_v15  ;;  %827 = vmatpush3.bf16.msra.mxu1 %v824_v10  ;;  %v173_v21 = vand.u32 4294901760, %v172_v13 }
  0x3c   :  { %833 = vmatprep.subr.bf16.mxu0 %v832_v16  ;;  %763 = vmatprep.subr.mxu1 %v1020_v5  ;;  %v160_v22 = vsub.f32 %v158_v11, %v159_v17  ;;  %v167_v23 = vsub.f32 %v165_v12, %v166_v18  ;;  %v840_v35 = vpack.c.bf16 %v166_v18, %v159_v17 }
  0x3d   :  { %835 = vmatpush3.bf16.msra.mxu0 %v832_v16  ;;  %783 = vmatprep.mubr.f32.mxu0 %v137_v19  ;;  %v138_v24 = vand.u32 4294901760, %v137_v19  ;;  %v148_v25 = vand.u32 4294901760, %v147_v20  ;;  %v174_v30 = vsub.f32 %v172_v13, %v173_v21 }
  0x3e   :  { %781 = vmatprep.subr.mxu0 %v172_v13  ;;  %v161_v26 = vand.u32 4294901760, %v160_v22  ;;  %v168_v27 = vand.u32 4294901760, %v167_v23 }
  0x3f   :  { %764 = vmatpush3.msra.mxu1 %v1020_v5  ;;  %v139_v28 = vsub.f32 %v137_v19, %v138_v24  ;;  %v149_v29 = vsub.f32 %v147_v20, %v148_v25  ;;  %v175_v34 = vand.u32 4294901760, %v174_v30 }
  0x40   :  { %v828_v33 = vpack.c.bf16 %v168_v27, %v161_v26 }
  0x41   :  { %782 = vmatpush3.msra.mxu0 %v172_v13  ;;  %v140_v31 = vand.u32 4294901760, %v139_v28  ;;  %v150_v32 = vand.u32 4294901760, %v149_v29 }
  0x42   :  { %784 = vmatmul.mubr.f32.vlgmr.msra.gmra.mrb[0].mxu0 %v147_v20  ;;  %837 = vmatprep.subr.bf16.mxu0 %v824_v10 }
  0x43   :  { %839 = vmatpush3.bf16.msra.mxu0 %v824_v10  ;;  %765 = vmatprep.mubr.f32.mxu1 %v140_v31 }
  0x44   :  { %790 = vmatprep.subr.mxu0 %v1020_v5  ;;  %792 = vmatprep.mubr.f32.mxu0 %v138_v24 }
  0x45   :  { %766 = vmatmul.mubr.f32.vlgmr.msra.gmra.mrb[0].mxu1 %v150_v32  ;;  %829 = vmatprep.subr.bf16.mxu1 %v828_v33 }
  0x46   :  { %831 = vmatpush3.bf16.msra.mxu1 %v828_v33  ;;  %774 = vmatprep.mubr.f32.mxu1 %v136_v14 }
  0x47   :  { %791 = vmatpush3.msra.mxu0 %v1020_v5  ;;  %772 = vmatprep.subr.mxu1 %v175_v34 }
  0x48   :  { %841 = vmatprep.subr.bf16.mxu0 %v840_v35 }
  0x4a   :  { %793 = vmatmul.mubr.f32.vlgmr.msra.gmra.mrb[0].mxu0 %v148_v25  ;;  %773 = vmatpush3.msra.mxu1 %v175_v34 }
  0x4b   :  { %843 = vmatpush3.bf16.msra.mxu0 %v840_v35  ;;  %801 = vmatprep.mubr.f32.mxu0 %v136_v14 }
  0x4c   :  { %799 = vmatprep.subr.mxu0 %v173_v21  ;;  %849 = vmatprep.subr.bf16.mxu1 %v848_v38 }
  0x4d   :  { %775 = vmatmul.mubr.f32.vlgmr.msra.gmra.mrb[0].mxu1 %v146_v15 }
  0x4e   :  { %851 = vmatpush3.bf16.msra.mxu1 %v848_v38 }
  0x4f   :  { %800 = vmatpush3.msra.mxu0 %v173_v21  ;;  %853 = vmatprep.subr.bf16.mxu1 %v852_v41 }
  0x50   :  { %845 = vmatprep.subr.bf16.mxu0 %v824_v10 }
  0x52   :  { %802 = vmatmul.mubr.f32.vlgmr.msra.gmra.mrb[0].mxu0 %v146_v15  ;;  %855 = vmatpush3.bf16.msra.mxu1 %v852_v41 }
  0x53   :  { %847 = vmatpush3.bf16.msra.mxu0 %v824_v10  ;;  %810 = vmatprep.mubr.f32.mxu0 %v136_v14 }
  0x54   :  { %808 = vmatprep.subr.mxu0 %v1020_v5 }
  0x57   :  { %809 = vmatpush3.msra.mxu0 %v1020_v5 }
  0x5a   :  { %811 = vmatmul.mubr.f32.vlgmr.msra.gmra.mrb[0].mxu0 %v146_v15 }
 0x120   :  { %v776_v42 = vpop.f32.mrb[0].mxu1 }
 0x121   :  { %v238_v43 = vpop.f32.mrb[1].mxu1 }
 0x12d   :  { %v812_v45 = vpop.f32.mrb[0].mxu0 }
 0x12e   :  { %v856_v46 = vadd.f32 %v812_v45, %v776_v42  ;;  %v573_v47 = vpop.f32.mrb[1].mxu0 }
 0x12f   :  { %v857_v48 = vadd.f32 %v573_v47, %v238_v43 }
 0x130   :  { %vm588_vm1 = vcmp.gt.f32.partialorder %v856_v46, %v714_v44 }
 0x131   :  { %vm587_vm3 = vcmp.gt.f32.partialorder %v857_v48, %v714_v44  ;;  %v716_v51 = vsel %vm588_vm1, 1.0, %v947_v49 }
 0x132   :  { %v715_v50 = vsel %vm587_vm3, 1.0, %v947_v49 }
 0x133   :  { %821 = vmatprep.mubr.msk.f32.mxu1 %vm599_vm2, %v715_v50 }
 0x134   :  { %822 = vmatmul.mubr.msk.f32.vlgmr.msra.gmra.mrb[2].mxu1 %vm599_vm2, %v716_v51 }
 0x207   :  { %v823_v53 = vpop.f32.mrb[2].mxu1 }
 0x208   :  { %v686_v54 = vsub.f32 %v823_v53, %v719_v52  ;;  %v672_v55 = vpop.f32.mrb[3].mxu1 }
 0x209   :  { %v685_v56 = vsub.f32 %v672_v55, %v719_v52 }
 0x20a   :  { %v688_v57 = vand.u32 2147483647, %v686_v54 }
 0x20b   :  { %v687_v58 = vand.u32 2147483647, %v685_v56 }
 0x20c   :  { %vm690_vm4 = vcmp.lt.f32.partialorder %v688_v57, 0.5 }
 0x20d   :  { %vm689_vm5 = vcmp.lt.f32.partialorder %v687_v58, 0.5  ;;  %v721_v62 = vsel %vm690_vm4, 1.0, %v947_v49 }
 0x20e   :  { %v720_v60 = vsel %vm689_vm5, 1.0, %v947_v49  ;;  %v700_v63 = vmul.f32 %v722_v59, %v721_v62 }
 0x20f   :  { %v699_v61 = vmul.f32 %v722_v59, %v720_v60 }
 0x211   :  { %701 = vadd.xlane.f32.xlu0 %v699_v61 }
 0x215   :  { %703 = vadd.xlane.f32.xlu0 %v700_v63 }
 0x29e   :  { %v702_v0 = vpop.xlane.xlu0 %701 }
 0x29f   :  { %706 = vst.msk [vmem:[%s1038_s3] sm:$0xff] %vm705_vm6, %v702_v0 }
 0x2a2   :  { %v704_v1 = vpop.xlane.xlu0 %703 }
 0x2a3   :  { %707 = vst.msk [vmem:[%s1038_s3 + $0x8] sm:$0xff] %vm705_vm6, %v704_v1 }
 0x2a4   :  { %712 = vsyncpa [#allocation3], 1 }
 0x2a5   :  { %713 = vsyncpa [#allocation5], 1 }

</bundles_post_ra>
